<compile_context>
chip_gen: v7x
topology: tpu7x:2x2x1
jax: 0.10.0
libtpu: 0.0.40
codegen_flags: <defaults>
</compile_context>

<pallas_src>
import functools

import jax
import jax.numpy as jnp
import numpy as np
from jax import lax
from jax.experimental import pallas as pl
from jax.experimental.pallas import tpu as pltpu


def _conv_bn_relu_kernel(x_ref, w_ref, b_ref, o_ref, patch_ref,
                         *, kh, oh, ow, stride, kwc, tn):
    # x_ref:     (1, HP, OW, KW*Cin)        bf16  padded input, W taps folded into lanes
    # w_ref:     (KH*KW*Cin, Cout_p)        bf16  VMEM-resident folded conv+BN weight
    # b_ref:     (1, Cout_p)                f32   VMEM-resident folded BN bias
    # o_ref:     (1, OH*OW, TN)             out   lane-dense output tile
    # patch_ref: (OH*OW, KH*KW*Cin)         bf16  VMEM scratch im2col patch
    x = x_ref[0]                                    # (HP, OW, KW*Cin)
    m = oh * ow

    # Build the im2col patch ONCE in VMEM: KH slices along the outer H axis (free),
    # lane-aligned reshape; the KW taps were already folded into lanes by the wrapper.
    for i in range(kh):
        if stride == 1:
            win = x[i:i + oh]                       # (OH, OW, KW*Cin)
        else:
            win = lax.slice(x, (i, 0, 0),
                            (i + (oh - 1) * stride + 1, ow, kwc),
                            (stride, 1, 1))
        patch_ref[:, i * kwc:(i + 1) * kwc] = win.reshape(m, kwc)

    # Select this grid step's TN-wide column of the resident weight / bias.
    col = pl.multiple_of(pl.program_id(1) * tn, tn)
    w = w_ref[:, pl.ds(col, tn)]                    # (KH*KW*Cin, TN) bf16
    bias = b_ref[:, pl.ds(col, tn)]                 # (1, TN) f32

    # One big-K MXU matmul (K = KH*KW*Cin) with f32 accumulation, then bias + ReLU.
    acc = jnp.dot(patch_ref[...], w, preferred_element_type=jnp.float32)
    o_ref[0] = jnp.maximum(acc + bias, 0.0).astype(o_ref.dtype)


def _pick_tn(cout):
    """256-wide output tiles on v6e/v7x (256-wide MXU), 128 elsewhere (v5e, v4)."""
    pref = 128
    try:
        kind = jax.devices()[0].device_kind.lower()
        if "v6" in kind or "v7" in kind:
            pref = 256
    except Exception:
        pass
    cout_128 = -(-cout // 128) * 128
    return min(pref, cout_128)


def _padded_bytes(shape, dtype):
    """Bytes of a VMEM tile after (sublane, 128) layout padding."""
    item = jnp.dtype(dtype).itemsize
    sub = {1: 32, 2: 16, 4: 8}.get(item, 8)
    s = [1, 1] + list(shape)
    s[-1] = -(-s[-1] // 128) * 128
    s[-2] = -(-s[-2] // sub) * sub
    total = item
    for d in s:
        total *= d
    return total


def conv_bn_relu(x_nchw, weight, gamma, beta, running_mean, running_var,
                 *, stride=1, pad=1, eps=1e-5, tn=None, out_dtype=jnp.float32):
    """x_nchw: (N, Cin, H, W). weight: (Cout, Cin, KH, KW) (PyTorch layouts)."""
    n, cin, h, w = x_nchw.shape
    cout, _, kh, kw = weight.shape
    oh = (h + 2 * pad - kh) // stride + 1
    ow = (w + 2 * pad - kw) // stride + 1
    hp, wp = h + 2 * pad, w + 2 * pad
    kwc = kw * cin
    m = oh * ow

    if tn is None:
        tn = _pick_tn(cout)
    cout_p = -(-cout // tn) * tn

    # ---- glue: NCHW -> NHWC, spatial pad, fold KW taps (+ W stride) into lanes ----
    # TODO(synk): accept/return NHWC where the surrounding model allows, so these
    # full-tensor relayout passes disappear.
    x = jnp.transpose(x_nchw, (0, 2, 3, 1))                          # (N, H, W, Cin)
    xp = jnp.pad(x, ((0, 0), (pad, pad), (pad, pad), (0, 0)))
    cols = [lax.slice(xp, (0, 0, j, 0),
                      (n, hp, j + (ow - 1) * stride + 1, cin),
                      (1, 1, stride, 1)) for j in range(kw)]
    xk = jnp.stack(cols, axis=3).reshape(n, hp, ow, kwc).astype(jnp.bfloat16)

    # ---- fold BN (eval mode) into the conv weight and a bias -----------------
    scale = gamma / jnp.sqrt(running_var + eps)                      # (Cout,)
    bias = beta - running_mean * scale                               # (Cout,)
    # (Cout, Cin, KH, KW) -> (KH, KW, Cin, Cout) -> (KH*KW*Cin, Cout), scale folded.
    w_f = jnp.transpose(weight, (2, 3, 1, 0)).reshape(kh * kw * cin, cout)
    w_f = w_f * scale[None, :]
    if cout_p != cout:
        w_f = jnp.pad(w_f, ((0, 0), (0, cout_p - cout)))
        bias = jnp.pad(bias, (0, cout_p - cout))
    w_f = w_f.astype(jnp.bfloat16)
    bias2 = bias.reshape(1, cout_p).astype(jnp.float32)

    # ---- VMEM budget from actual block footprints (v7x-safe) ------------------
    est = (2 * _padded_bytes((hp, ow, kwc), jnp.bfloat16)        # input block (x2 buf)
           + 2 * _padded_bytes((kh * kw * cin, cout_p), jnp.bfloat16)  # resident weight
           + 2 * _padded_bytes((1, cout_p), jnp.float32)         # resident bias
           + 2 * _padded_bytes((m, tn), out_dtype)               # output block (x2 buf)
           + _padded_bytes((m, kh * kw * cin), jnp.bfloat16)     # im2col scratch
           + _padded_bytes((m, tn), jnp.float32))                # f32 matmul result
    vmem_limit = int(min(64 * 1024 * 1024, max(32 * 1024 * 1024, 2 * est)))

    grid = (n, cout_p // tn)
    kernel = functools.partial(_conv_bn_relu_kernel,
                               kh=kh, oh=oh, ow=ow, stride=stride, kwc=kwc, tn=tn)

    out = pl.pallas_call(
        kernel,
        out_shape=jax.ShapeDtypeStruct((n, m, cout_p), out_dtype),
        grid_spec=pltpu.PrefetchScalarGridSpec(
            num_scalar_prefetch=0,
            grid=grid,
            in_specs=[
                # Padded input image for batch element b (grid-invariant along j).
                pl.BlockSpec((1, hp, ow, kwc), lambda b, j: (b, 0, 0, 0)),
                # Full folded weight / bias, grid-invariant -> fetched once, resident.
                pl.BlockSpec((kh * kw * cin, cout_p), lambda b, j: (0, 0)),
                pl.BlockSpec((1, cout_p), lambda b, j: (0, 0)),
            ],
            out_specs=pl.BlockSpec((1, m, tn), lambda b, j: (b, 0, j)),
            scratch_shapes=[pltpu.VMEM((m, kh * kw * cin), jnp.bfloat16)],
        ),
        compiler_params=pltpu.CompilerParams(
            dimension_semantics=("parallel", "parallel"),
            vmem_limit_bytes=vmem_limit),
    )(xk, w_f, bias2)

    out = out[:, :, :cout].reshape(n, oh, ow, cout)
    return jnp.transpose(out, (0, 3, 1, 2))                          # back to NCHW


def _reference(x_nchw, weight, gamma, beta, running_mean, running_var,
               *, stride=1, pad=1, eps=1e-5):
    y = lax.conv_general_dilated(
        x_nchw, weight, window_strides=(stride, stride),
        padding=[(pad, pad), (pad, pad)],
        dimension_numbers=("NCHW", "OIHW", "NCHW"))
    scale = (gamma / jnp.sqrt(running_var + eps)).reshape(1, -1, 1, 1)
    bias = (beta - running_mean * gamma / jnp.sqrt(running_var + eps)).reshape(1, -1, 1, 1)
    return jnp.maximum(y * scale + bias, 0.0)


if __name__ == "__main__":
    key = jax.random.PRNGKey(0)
    k_x, k_w, k_g, k_b, k_m, k_v = jax.random.split(key, 6)

    N, Cin, H, W = 2, 4, 16, 16
    Cout, K, stride, pad = 8, 3, 1, 1

    x = jax.random.normal(k_x, (N, Cin, H, W), dtype=jnp.float32)
    weight = jax.random.normal(k_w, (Cout, Cin, K, K), dtype=jnp.float32) * 0.1
    gamma = jax.random.uniform(k_g, (Cout,), dtype=jnp.float32, minval=0.5, maxval=1.5)
    beta = jax.random.normal(k_b, (Cout,), dtype=jnp.float32) * 0.1
    running_mean = jax.random.normal(k_m, (Cout,), dtype=jnp.float32) * 0.1
    running_var = jax.random.uniform(k_v, (Cout,), dtype=jnp.float32, minval=0.5, maxval=1.5)

    fn = jax.jit(functools.partial(conv_bn_relu, stride=stride, pad=pad))
    out = fn(x, weight, gamma, beta, running_mean, running_var)
    out = jax.block_until_ready(out)

    ref = _reference(x, weight, gamma, beta, running_mean, running_var,
                     stride=stride, pad=pad)
    assert out.shape == (N, Cout, H, W)
    # bf16 inputs/weights on the MXU with f32 accumulation -> ~1% tolerance suffices.
    np.testing.assert_allclose(np.asarray(out), np.asarray(ref), rtol=2e-2, atol=2e-2)

    print("KERNEL_OK")
</pallas_src>

<mosaic_0001>
module attributes {stable_mosaic.version = 11 : i64} {
  func.func @_conv_bn_relu_kernel(%arg0: i32, %arg1: i32, %arg2: memref<1x18x16x12xbf16, #tpu.memory_space<vmem>>, %arg3: memref<36x128xbf16, #tpu.memory_space<vmem>>, %arg4: memref<1x128xf32, #tpu.memory_space<vmem>>, %arg5: memref<1x256x128xf32, #tpu.memory_space<vmem>>, %arg6: memref<256x36xbf16, #tpu.memory_space<vmem>>) attributes {dimension_semantics = [#tpu.dimension_semantics<parallel>, #tpu.dimension_semantics<parallel>], iteration_bounds = array<i64: 2, 1>, scalar_prefetch = 0 : i64, scratch_operands = 1 : i64, tpu.core_type = #tpu.core_type<tc>, window_params = [{transform_indices = @transform_0, window_bounds = array<i64: 1, 18, 16, 12>}, {pipeline_mode = #tpu.pipeline_mode<synchronous>, transform_indices = @transform_1, window_bounds = array<i64: 36, 128>}, {pipeline_mode = #tpu.pipeline_mode<synchronous>, transform_indices = @transform_2, window_bounds = array<i64: 1, 128>}, {transform_indices = @transform_3, window_bounds = array<i64: 1, 256, 128>}]} {
    %c0 = arith.constant 0 : index
    %c0_0 = arith.constant 0 : index
    %c0_1 = arith.constant 0 : index
    %c0_2 = arith.constant 0 : index
    %0 = vector.load %arg2[%c0, %c0_0, %c0_1, %c0_2] : memref<1x18x16x12xbf16, #tpu.memory_space<vmem>>, vector<1x18x16x12xbf16>
    %1 = vector.shape_cast %0 : vector<1x18x16x12xbf16> to vector<18x16x12xbf16>
    %2 = vector.extract_strided_slice %1 {offsets = [0, 0, 0], sizes = [16, 16, 12], strides = [1, 1, 1]} : vector<18x16x12xbf16> to vector<16x16x12xbf16>
    %3 = vector.shape_cast %2 : vector<16x16x12xbf16> to vector<256x12xbf16>
    %c0_3 = arith.constant 0 : index
    %c0_4 = arith.constant 0 : index
    %4 = vector.load %arg6[%c0_3, %c0_4] : memref<256x36xbf16, #tpu.memory_space<vmem>>, vector<256x12xbf16>
    tpu.vector_store %arg6[%c0_3, %c0_4], %3 {strides = array<i32>} : memref<256x36xbf16, #tpu.memory_space<vmem>>, vector<256x12xbf16>,
    %5 = vector.extract_strided_slice %1 {offsets = [1, 0, 0], sizes = [16, 16, 12], strides = [1, 1, 1]} : vector<18x16x12xbf16> to vector<16x16x12xbf16>
    %6 = vector.shape_cast %5 : vector<16x16x12xbf16> to vector<256x12xbf16>
    %c0_5 = arith.constant 0 : index
    %c12 = arith.constant 12 : index
    %7 = vector.load %arg6[%c0_5, %c12] : memref<256x36xbf16, #tpu.memory_space<vmem>>, vector<256x12xbf16>
    tpu.vector_store %arg6[%c0_5, %c12], %6 {strides = array<i32>} : memref<256x36xbf16, #tpu.memory_space<vmem>>, vector<256x12xbf16>,
    %8 = vector.extract_strided_slice %1 {offsets = [2, 0, 0], sizes = [16, 16, 12], strides = [1, 1, 1]} : vector<18x16x12xbf16> to vector<16x16x12xbf16>
    %9 = vector.shape_cast %8 : vector<16x16x12xbf16> to vector<256x12xbf16>
    %c0_6 = arith.constant 0 : index
    %c24 = arith.constant 24 : index
    %10 = vector.load %arg6[%c0_6, %c24] : memref<256x36xbf16, #tpu.memory_space<vmem>>, vector<256x12xbf16>
    tpu.vector_store %arg6[%c0_6, %c24], %9 {strides = array<i32>} : memref<256x36xbf16, #tpu.memory_space<vmem>>, vector<256x12xbf16>,
    %c128_i32 = arith.constant 128 : i32
    %11 = arith.muli %arg1, %c128_i32 : i32
    %12 = tpu.assume_multiple %11, 128 : i32
    %c0_7 = arith.constant 0 : index
    %13 = arith.index_cast %12 : i32 to index
    %14 = vector.load %arg3[%c0_7, %13] : memref<36x128xbf16, #tpu.memory_space<vmem>>, vector<36x128xbf16>
    %c0_8 = arith.constant 0 : index
    %15 = arith.index_cast %12 : i32 to index
    %16 = vector.load %arg4[%c0_8, %15] : memref<1x128xf32, #tpu.memory_space<vmem>>, vector<1x128xf32>
    %c0_9 = arith.constant 0 : index
    %c0_10 = arith.constant 0 : index
    %17 = vector.load %arg6[%c0_9, %c0_10] : memref<256x36xbf16, #tpu.memory_space<vmem>>, vector<256x36xbf16>
    %cst = arith.constant dense<0.000000e+00> : vector<256x128xf32>
    %18 = tpu.matmul %17, %14, %cst {dimension_numbers = #tpu.dot_dimension_numbers<[1], [0], [0], [1], [0, 0, 1, 1], [], []>} : vector<256x36xbf16>, vector<36x128xbf16>, vector<256x128xf32> -> vector<256x128xf32>
    %19 = vector.broadcast %16 : vector<1x128xf32> to vector<256x128xf32>
    %20 = arith.addf %18, %19 : vector<256x128xf32>
    %cst_11 = arith.constant 0.000000e+00 : f32
    %21 = vector.broadcast %cst_11 : f32 to vector<256x128xf32>
    %22 = arith.maximumf %20, %21 : vector<256x128xf32>
    %c0_12 = arith.constant 0 : index
    %c0_13 = arith.constant 0 : index
    %c0_14 = arith.constant 0 : index
    %23 = vector.load %arg5[%c0_12, %c0_13, %c0_14] : memref<1x256x128xf32, #tpu.memory_space<vmem>>, vector<1x256x128xf32>
    %24 = vector.shape_cast %23 : vector<1x256x128xf32> to vector<256x128xf32>
    %25 = vector.shape_cast %22 : vector<256x128xf32> to vector<1x256x128xf32>
    tpu.vector_store %arg5[%c0_12, %c0_13, %c0_14], %25 {strides = array<i32>} : memref<1x256x128xf32, #tpu.memory_space<vmem>>, vector<1x256x128xf32>,
    return
  }
  func.func @transform_0(%arg0: i32, %arg1: i32) -> (i32, i32, i32, i32) {
    %c0_i32 = arith.constant 0 : i32
    %c0_i32_0 = arith.constant 0 : i32
    %c0_i32_1 = arith.constant 0 : i32
    %c0_i32_2 = arith.constant 0 : i32
    return %arg0, %c0_i32, %c0_i32_0, %c0_i32_1 : i32, i32, i32, i32
  }
  func.func @transform_1(%arg0: i32, %arg1: i32) -> (i32, i32) {
    %c0_i32 = arith.constant 0 : i32
    %c0_i32_0 = arith.constant 0 : i32
    %c0_i32_1 = arith.constant 0 : i32
    return %c0_i32, %c0_i32_0 : i32, i32
  }
  func.func @transform_2(%arg0: i32, %arg1: i32) -> (i32, i32) {
    %c0_i32 = arith.constant 0 : i32
    %c0_i32_0 = arith.constant 0 : i32
    %c0_i32_1 = arith.constant 0 : i32
    return %c0_i32, %c0_i32_0 : i32, i32
  }
  func.func @transform_3(%arg0: i32, %arg1: i32) -> (i32, i32, i32) {
    %c0_i32 = arith.constant 0 : i32
    %c0_i32_0 = arith.constant 0 : i32
    return %arg0, %c0_i32, %arg1 : i32, i32, i32
  }
}

</mosaic_0001>

<bundles_post_ra>
// kernel: conv_bn_relu.1
= control target key start
LH: loop header
LB: loop body
LE: loop exit
PB: predicated region body
PF: predicated region fallthrough
CT: control target
= control target key end

     0   :  { %s1096_s12 = smov 0   ;;  %s1098_s13 = smov 0   ;;  %s1334_s0 = inlined_call_operand.vmem [shape: bf16[2,18,16,12], index: 0, kind: input, shape index: {}]   ;;  %s1335_s1 = inlined_call_operand.vmem [shape: bf16[36,128], index: 1, kind: input, shape index: {}]   ;;  %s1336_s2 = inlined_call_operand.vmem [shape: f32[1,128], index: 2, kind: input, shape index: {}]   ;;  %s1337_s3 = inlined_call_operand.vmem [shape: f32[2,256,128], index: 3, kind: output, shape index: {}]  }
   0x1   :  { %s1100_s14 = smov 0  }
   0x2 LB: > { %s25_s15 = sadd.s32 1, %s1068_s13  ;;  %p892_p0 = scmp.ge.s32.totalorder %s1072_s14, 1  ;;  %s1072_s14 = sphi %s1100_s14, %s13_s14   ;;  %s1068_s13 = sphi %s1098_s13, %s1339_s13   ;;  %s1064_s12 = sphi %s1096_s12, %s1338_s12  }
   0x3   : > { %p27_p1 = scmp.ge.s32.totalorder %s25_s15, 2  ;;  %p151_p2 = scmp.lt.s32.totalorder %s1072_s14, 3 }
   0x5   : > { %s1341_s15 = smov (%p27_p1, %s25_s15), 0  ;;  %p152_p3 = pnand %p892_p0, %p151_p2 }
   0x6   : > { %p178_p4 = scmp.lt.s32.totalorder (!%p152_p3), %s1064_s12, 1  ;;  %v1047_v0 = vld [vmem:[%s1335_s1] sm:$0xff] (!%p152_p3)   ;;  %vm324_vm0 = vcmask (!%p152_p3), 97280   ;;  %s1074_s22 = smov (!%p152_p3), 12   ;;  %v1048_v17 = vld [vmem:[%s1335_s1 + $0x8] sm:$0xff] (!%p152_p3)   ;;  %vm579_vm1 = vcmask (!%p152_p3), 1041408  }
   0x7   : > { %155 = sbr.rel (%p152_p3) target bundleno = 423 (0x1a7), region = 32  ;;  %956 = vmatprep.subr.bf16.mxu0 (!%p152_p3), %v1047_v0  ;;  %994 = vmatprep.subr.bf16.mxu1 (!%p152_p3), %v1047_v0  ;;  %s1075_s23 = smov (!%p152_p3), 24   ;;  %v1049_v18 = vld [vmem:[%s1335_s1 + $0x10] ss:$0 sps:$4 sm:$0x33] (!%p152_p3)   ;;  %vm394_vm2 = vcmask (!%p152_p3), 195680  }
   0x8   : > { %957 = vmatpush3.bf16.msra.mxu0 (!%p152_p3), %v1047_v0  ;;  %997 = vmatpush3.bf16.msra.mxu1 (!%p152_p3), %v1047_v0  ;;  %v581_v19 = vsel (!%p152_p3), %vm579_vm1, %v1049_v18, 0  ;;  %vm464_vm3 = vcmask (!%p152_p3), 294080   ;;  %vm530_vm4 = vcmask (!%p152_p3), 293888  }
   0x9   : > { %958 = vmatprep.subr.bf16.mxu0 (!%p152_p3), %v1048_v17  ;;  %995 = vmatprep.subr.bf16.mxu1 (!%p152_p3), %v1048_v17 }
   0xc   : > { %959 = vmatpush3.bf16.msra.mxu0 (!%p152_p3), %v1048_v17  ;;  %998 = vmatpush3.bf16.msra.mxu1 (!%p152_p3), %v1048_v17 }
   0xd   : > { %1000 = vmatprep.subr.msk.bf16.mxu0 (!%p152_p3), %vm579_vm1, %v1049_v18  ;;  %1001 = vmatprep.subr.msk.bf16.mxu1 (!%p152_p3), %vm579_vm1, %v1049_v18 }
   0xe   : > { %s1343_s12 = smov (!%p178_p4, %s1064_s12), 1 }
   0xf   : > { %s1002_s18 = smul.u32 144, %s1343_s12  ;;  %s936_s30 = sshll.u32 %s1343_s12, 8 }
  0x10   : > { %961 = vmatpush3.bf16.msra.mxu0 %v581_v19  ;;  %999 = vmatpush3.bf16.msra.mxu1 %v581_v19  ;;  %s1260_s6 = scalar_lea.vmem %s1337_s3, %s936_s30 }
  0x11   : > { %s1123_s21 = scalar_lea.vmem %s1334_s0, %s1002_s18 }
  0x12   : > { %v1029_v1 = vld [vmem:[%s1123_s21 + $0x10] sm:$0xff]   ;;  %v1030_v2 = vld [vmem:[%s1123_s21 + $0x8] sm:$0xff]   ;;  %v1033_v5 = vld [vmem:[%s1123_s21 + $0x58] sm:$0xff]  }
  0x13   : > { %348 = vrot.lane.b32.xlu1 %v1029_v1, %s1074_s22  ;;  %327 = vst.msk [vmem:[#allocation2 + $0x10] sm:$0xff] %vm324_vm0, %v1029_v1  ;;  %v1031_v3 = vld [vmem:[%s1123_s21 + $0x50] sm:$0xff]   ;;  %346 = vrot.lane.b32.xlu0 %v1030_v2, %s1074_s22  ;;  %326 = vst.msk [vmem:[#allocation2 + $0x8] sm:$0xff] %vm324_vm0, %v1030_v2  ;;  %v1133_v4 = vld [vmem:[%s1123_s21 + $0x48] sm:$0xff]  }
  0x14   : > { %335 = vst.msk [vmem:[#allocation2 + $0x50] sm:$0xff] %vm324_vm0, %v1031_v3  ;;  %334 = vst.msk [vmem:[#allocation2 + $0x48] sm:$0xff] %vm324_vm0, %v1133_v4  ;;  %v1034_v6 = vld [vmem:[%s1123_s21 + $0x18] sm:$0xff]   ;;  %v1035_v7 = vld [vmem:[%s1123_s21 + $0x60] sm:$0xff]  }
  0x15   : > { %336 = vst.msk [vmem:[#allocation2 + $0x58] sm:$0xff] %vm324_vm0, %v1033_v5  ;;  %328 = vst.msk [vmem:[#allocation2 + $0x18] sm:$0xff] %vm324_vm0, %v1034_v6  ;;  %v1036_v8 = vld [vmem:[%s1123_s21 + $0x20] sm:$0xff]   ;;  %v1037_v9 = vld [vmem:[%s1123_s21 + $0x68] sm:$0xff]  }
  0x16   : > { %337 = vst.msk [vmem:[#allocation2 + $0x60] sm:$0xff] %vm324_vm0, %v1035_v7  ;;  %329 = vst.msk [vmem:[#allocation2 + $0x20] sm:$0xff] %vm324_vm0, %v1036_v8  ;;  %v1038_v10 = vld [vmem:[%s1123_s21 + $0x28] sm:$0xff]   ;;  %v1039_v11 = vld [vmem:[%s1123_s21 + $0x70] sm:$0xff]  }
  0x17   : > { %364 = vrot.lane.b32.xlu1 %v1031_v3, %s1074_s22  ;;  %362 = vrot.lane.b32.xlu0 %v1133_v4, %s1074_s22  ;;  %338 = vst.msk [vmem:[#allocation2 + $0x68] sm:$0xff] %vm324_vm0, %v1037_v9  ;;  %330 = vst.msk [vmem:[#allocation2 + $0x28] sm:$0xff] %vm324_vm0, %v1038_v10  ;;  %v1040_v12 = vld [vmem:[%s1123_s21 + $0x30] sm:$0xff]   ;;  %v1041_v13 = vld [vmem:[%s1123_s21 + $0x78] sm:$0xff]  }
  0x18   : > { %339 = vst.msk [vmem:[#allocation2 + $0x70] sm:$0xff] %vm324_vm0, %v1039_v11  ;;  %331 = vst.msk [vmem:[#allocation2 + $0x30] sm:$0xff] %vm324_vm0, %v1040_v12  ;;  %v1042_v14 = vld [vmem:[%s1123_s21 + $0x38] sm:$0xff]   ;;  %v1044_v15 = vld [vmem:[%s1123_s21 + $0x40] sm:$0xff]  }
  0x19   : > { %340 = vst.msk [vmem:[#allocation2 + $0x78] sm:$0xff] %vm324_vm0, %v1041_v13  ;;  %332 = vst.msk [vmem:[#allocation2 + $0x38] sm:$0xff] %vm324_vm0, %v1042_v14  ;;  %v1046_v16 = vld [vmem:[%s1123_s21] sm:$0xff]   ;;  %v1045_v21 = vld [vmem:[%s1123_s21 + $0x88] sm:$0xff]  }
  0x1a   : > { %333 = vst.msk [vmem:[#allocation2 + $0x40] sm:$0xff] %vm324_vm0, %v1044_v15  ;;  %325 = vst.msk [vmem:[#allocation2] sm:$0xff] %vm324_vm0, %v1046_v16  ;;  %v1043_v20 = vld [vmem:[%s1123_s21 + $0x80] sm:$0xff]  }
  0x1b   : > { %432 = vrot.lane.b32.xlu1 %v1031_v3, %s1075_s23  ;;  %416 = vrot.lane.b32.xlu0 %v1029_v1, %s1075_s23 }
  0x1f   : > { %434 = vrot.lane.b32.xlu1 %v1033_v5, %s1075_s23  ;;  %418 = vrot.lane.b32.xlu0 %v1034_v6, %s1075_s23 }
  0x23   : > { %366 = vrot.lane.b32.xlu1 %v1033_v5, %s1074_s22  ;;  %350 = vrot.lane.b32.xlu0 %v1034_v6, %s1074_s22  ;;  %v1253_v6 = vld [vmem:[%s1336_s2] ss:$0 sm:$0xff] }
  0x27   : > { %368 = vrot.lane.b32.xlu1 %v1035_v7, %s1074_s22  ;;  %352 = vrot.lane.b32.xlu0 %v1036_v8, %s1074_s22 }
  0x2b   : > { %436 = vrot.lane.b32.xlu1 %v1035_v7, %s1075_s23  ;;  %420 = vrot.lane.b32.xlu0 %v1036_v8, %s1075_s23 }
  0x2f   : > { %438 = vrot.lane.b32.xlu1 %v1037_v9, %s1075_s23  ;;  %422 = vrot.lane.b32.xlu0 %v1038_v10, %s1075_s23 }
  0x33   : > { %370 = vrot.lane.b32.xlu1 %v1037_v9, %s1074_s22  ;;  %354 = vrot.lane.b32.xlu0 %v1038_v10, %s1074_s22 }
  0x37   : > { %372 = vrot.lane.b32.xlu1 %v1039_v11, %s1074_s22  ;;  %356 = vrot.lane.b32.xlu0 %v1040_v12, %s1074_s22 }
  0x3b   : > { %440 = vrot.lane.b32.xlu1 %v1039_v11, %s1075_s23  ;;  %424 = vrot.lane.b32.xlu0 %v1040_v12, %s1075_s23 }
  0x3f   : > { %442 = vrot.lane.b32.xlu1 %v1041_v13, %s1075_s23  ;;  %426 = vrot.lane.b32.xlu0 %v1042_v14, %s1075_s23 }
  0x43   : > { %374 = vrot.lane.b32.xlu1 %v1041_v13, %s1074_s22  ;;  %358 = vrot.lane.b32.xlu0 %v1042_v14, %s1074_s22 }
  0x47   : > { %376 = vrot.lane.b32.xlu1 %v1043_v20, %s1074_s22  ;;  %360 = vrot.lane.b32.xlu0 %v1044_v15, %s1074_s22 }
  0x4b   : > { %444 = vrot.lane.b32.xlu1 %v1043_v20, %s1075_s23  ;;  %428 = vrot.lane.b32.xlu0 %v1044_v15, %s1075_s23 }
  0x4f   : > { %446 = vrot.lane.b32.xlu1 %v1045_v21, %s1075_s23  ;;  %430 = vrot.lane.b32.xlu0 %v1133_v4, %s1075_s23 }
  0x85   : > { %v349_v22 = vpop.permute.xlu1 %348  ;;  %v347_v23 = vpop.permute.xlu0 %346 }
  0x86   : > { %396 = vst.msk [vmem:[#allocation2 + $0x8] sm:$0xff] %vm394_vm2, %v349_v22  ;;  %395 = vst.msk [vmem:[#allocation2] sm:$0xff] %vm394_vm2, %v347_v23 }
  0x89   : > { %v365_v24 = vpop.permute.xlu1 %364  ;;  %v363_v25 = vpop.permute.xlu0 %362 }
  0x8a   : > { %404 = vst.msk [vmem:[#allocation2 + $0x48] sm:$0xff] %vm394_vm2, %v365_v24  ;;  %403 = vst.msk [vmem:[#allocation2 + $0x40] sm:$0xff] %vm394_vm2, %v363_v25 }
  0x8d   : > { %v433_v26 = vpop.permute.xlu1 %432  ;;  %v417_v27 = vpop.permute.xlu0 %416 }
  0x8e   : > { %473 = vst.msk [vmem:[#allocation2 + $0x40] sm:$0xff] %vm464_vm3, %v433_v26  ;;  %465 = vst.msk [vmem:[#allocation2] sm:$0xff] %vm464_vm3, %v417_v27 }
  0x91   : > { %v435_v28 = vpop.permute.xlu1 %434  ;;  %v419_v29 = vpop.permute.xlu0 %418 }
  0x92   : > { %474 = vst.msk [vmem:[#allocation2 + $0x48] sm:$0xff] %vm464_vm3, %v435_v28  ;;  %466 = vst.msk [vmem:[#allocation2 + $0x8] sm:$0xff] %vm464_vm3, %v419_v29 }
  0x95   : > { %v367_v30 = vpop.permute.xlu1 %366  ;;  %v501_v31 = vld [vmem:[#allocation2 + $0x40] sm:$0xff]  ;;  %v351_v32 = vpop.permute.xlu0 %350 }
  0x96   : > { %405 = vst.msk [vmem:[#allocation2 + $0x50] sm:$0xff] %vm394_vm2, %v367_v30  ;;  %v493_v33 = vld [vmem:[#allocation2] sm:$0xff]  ;;  %978 = vmatprep.mubr.msk.bf16.mxu1 %vm530_vm4, %v501_v31  ;;  %397 = vst.msk [vmem:[#allocation2 + $0x10] sm:$0xff] %vm394_vm2, %v351_v32 }
  0x97   : > { %962 = vmatprep.mubr.msk.bf16.mxu0 %vm530_vm4, %v493_v33 }
  0x99   : > { %v369_v34 = vpop.permute.xlu1 %368  ;;  %v502_v35 = vld [vmem:[#allocation2 + $0x48] sm:$0xff]  ;;  %v353_v36 = vpop.permute.xlu0 %352 }
  0x9a   : > { %406 = vst.msk [vmem:[#allocation2 + $0x58] sm:$0xff] %vm394_vm2, %v369_v34  ;;  %v494_v37 = vld [vmem:[#allocation2 + $0x8] sm:$0xff]  ;;  %979 = vmatmul.mubr.msk.bf16.vlgmr.msra.gmra.mrb[0].mxu1 %vm530_vm4, %v502_v35  ;;  %398 = vst.msk [vmem:[#allocation2 + $0x18] sm:$0xff] %vm394_vm2, %v353_v36 }
  0x9b   : > { %963 = vmatmul.mubr.msk.bf16.vlgmr.msra.gmra.mrb[0].mxu0 %vm530_vm4, %v494_v37 }
  0x9d   : > { %v437_v38 = vpop.permute.xlu1 %436  ;;  %v421_v39 = vpop.permute.xlu0 %420 }
  0x9e   : > { %475 = vst.msk [vmem:[#allocation2 + $0x50] sm:$0xff] %vm464_vm3, %v437_v38  ;;  %467 = vst.msk [vmem:[#allocation2 + $0x10] sm:$0xff] %vm464_vm3, %v421_v39 }
  0xa1   : > { %v439_v40 = vpop.permute.xlu1 %438  ;;  %v423_v41 = vpop.permute.xlu0 %422 }
  0xa2   : > { %476 = vst.msk [vmem:[#allocation2 + $0x58] sm:$0xff] %vm464_vm3, %v439_v40  ;;  %468 = vst.msk [vmem:[#allocation2 + $0x18] sm:$0xff] %vm464_vm3, %v423_v41 }
  0xa5   : > { %v371_v42 = vpop.permute.xlu1 %370  ;;  %v503_v43 = vld [vmem:[#allocation2 + $0x50] sm:$0xff]  ;;  %v355_v44 = vpop.permute.xlu0 %354 }
  0xa6   : > { %407 = vst.msk [vmem:[#allocation2 + $0x60] sm:$0xff] %vm394_vm2, %v371_v42  ;;  %v495_v45 = vld [vmem:[#allocation2 + $0x10] sm:$0xff]  ;;  %982 = vmatprep.mubr.msk.bf16.mxu1 %vm530_vm4, %v503_v43  ;;  %399 = vst.msk [vmem:[#allocation2 + $0x20] sm:$0xff] %vm394_vm2, %v355_v44 }
  0xa7   : > { %966 = vmatprep.mubr.msk.bf16.mxu0 %vm530_vm4, %v495_v45 }
  0xa9   : > { %v373_v46 = vpop.permute.xlu1 %372  ;;  %v504_v47 = vld [vmem:[#allocation2 + $0x58] sm:$0xff]  ;;  %v357_v48 = vpop.permute.xlu0 %356 }
  0xaa   : > { %408 = vst.msk [vmem:[#allocation2 + $0x68] sm:$0xff] %vm394_vm2, %v373_v46  ;;  %v496_v49 = vld [vmem:[#allocation2 + $0x18] sm:$0xff]  ;;  %983 = vmatmul.mubr.msk.bf16.gmra.mrb[4].mxu1 %vm530_vm4, %v504_v47  ;;  %400 = vst.msk [vmem:[#allocation2 + $0x28] sm:$0xff] %vm394_vm2, %v357_v48 }
  0xab   : > { %967 = vmatmul.mubr.msk.bf16.gmra.mrb[4].mxu0 %vm530_vm4, %v496_v49 }
  0xad   : > { %v441_v50 = vpop.permute.xlu1 %440  ;;  %v425_v51 = vpop.permute.xlu0 %424 }
  0xae   : > { %477 = vst.msk [vmem:[#allocation2 + $0x60] sm:$0xff] %vm464_vm3, %v441_v50  ;;  %469 = vst.msk [vmem:[#allocation2 + $0x20] sm:$0xff] %vm464_vm3, %v425_v51 }
  0xb1   : > { %v443_v52 = vpop.permute.xlu1 %442  ;;  %v427_v53 = vpop.permute.xlu0 %426 }
  0xb2   : > { %478 = vst.msk [vmem:[#allocation2 + $0x68] sm:$0xff] %vm464_vm3, %v443_v52  ;;  %470 = vst.msk [vmem:[#allocation2 + $0x28] sm:$0xff] %vm464_vm3, %v427_v53 }
  0xb5   : > { %v375_v54 = vpop.permute.xlu1 %374  ;;  %v505_v55 = vld [vmem:[#allocation2 + $0x60] sm:$0xff]  ;;  %v359_v56 = vpop.permute.xlu0 %358 }
  0xb6   : > { %409 = vst.msk [vmem:[#allocation2 + $0x70] sm:$0xff] %vm394_vm2, %v375_v54  ;;  %v497_v57 = vld [vmem:[#allocation2 + $0x20] sm:$0xff]  ;;  %986 = vmatprep.mubr.msk.bf16.mxu1 %vm530_vm4, %v505_v55  ;;  %401 = vst.msk [vmem:[#allocation2 + $0x30] sm:$0xff] %vm394_vm2, %v359_v56 }
  0xb7   : > { %970 = vmatprep.mubr.msk.bf16.mxu0 %vm530_vm4, %v497_v57 }
  0xb9   : > { %v377_v58 = vpop.permute.xlu1 %376  ;;  %v506_v59 = vld [vmem:[#allocation2 + $0x68] sm:$0xff]  ;;  %v361_v60 = vpop.permute.xlu0 %360 }
  0xba   : > { %410 = vst.msk [vmem:[#allocation2 + $0x78] sm:$0xff] %vm394_vm2, %v377_v58  ;;  %v498_v61 = vld [vmem:[#allocation2 + $0x28] sm:$0xff]  ;;  %987 = vmatmul.mubr.msk.bf16.gmra.mrb[8].mxu1 %vm530_vm4, %v506_v59  ;;  %402 = vst.msk [vmem:[#allocation2 + $0x38] sm:$0xff] %vm394_vm2, %v361_v60 }
  0xbb   : > { %971 = vmatmul.mubr.msk.bf16.gmra.mrb[8].mxu0 %vm530_vm4, %v498_v61 }
  0xbd   : > { %v445_v62 = vpop.permute.xlu1 %444  ;;  %v429_v63 = vpop.permute.xlu0 %428 }
  0xbe   : > { %479 = vst.msk [vmem:[#allocation2 + $0x70] sm:$0xff] %vm464_vm3, %v445_v62  ;;  %471 = vst.msk [vmem:[#allocation2 + $0x30] sm:$0xff] %vm464_vm3, %v429_v63 }
  0xc1   : > { %v447_v0 = vpop.permute.xlu1 %446  ;;  %v431_v1 = vpop.permute.xlu0 %430 }
  0xc2   : > { %480 = vst.msk [vmem:[#allocation2 + $0x78] sm:$0xff] %vm464_vm3, %v447_v0  ;;  %472 = vst.msk [vmem:[#allocation2 + $0x38] sm:$0xff] %vm464_vm3, %v431_v1 }
  0xc5   : > { %v507_v2 = vld [vmem:[#allocation2 + $0x70] sm:$0xff] }
  0xc6   : > { %v499_v3 = vld [vmem:[#allocation2 + $0x30] sm:$0xff]  ;;  %990 = vmatprep.mubr.msk.bf16.mxu1 %vm530_vm4, %v507_v2 }
  0xc7   : > { %974 = vmatprep.mubr.msk.bf16.mxu0 %vm530_vm4, %v499_v3 }
  0xc9   : > { %v508_v4 = vld [vmem:[#allocation2 + $0x78] sm:$0xff] }
  0xca   : > { %v500_v5 = vld [vmem:[#allocation2 + $0x38] sm:$0xff]  ;;  %991 = vmatmul.mubr.msk.bf16.gmra.mrb[12].mxu1 %vm530_vm4, %v508_v4 }
  0xcb   : > { %975 = vmatmul.mubr.msk.bf16.gmra.mrb[12].mxu0 %vm530_vm4, %v500_v5 }
 0x16d   : > { %v980_v7 = vpop.f32.mrb[0].mxu1 }
 0x16e   : > { %v964_v8 = vpop.f32.mrb[0].mxu0  ;;  %v690_v9 = vadd.f32 %v980_v7, %v1253_v6  ;;  %v681_v10 = vpop.f32.mrb[1].mxu1 }
 0x16f   : > { %v626_v11 = vadd.f32 %v964_v8, %v1253_v6  ;;  %v617_v12 = vpop.f32.mrb[1].mxu0  ;;  %v682_v13 = vadd.f32 %v1253_v6, %v681_v10  ;;  %v981_v14 = vpop.f32.mrb[2].mxu1 }
 0x170   : > { %v762_v15 = vmax.f32 %v690_v9, 0.0  ;;  %v618_v16 = vadd.f32 %v1253_v6, %v617_v12  ;;  %v965_v17 = vpop.f32.mrb[2].mxu0  ;;  %v693_v18 = vadd.f32 %v981_v14, %v1253_v6  ;;  %v684_v19 = vpop.f32.mrb[3].mxu1 }
 0x171   : > { %v746_v20 = vmax.f32 %v626_v11, 0.0  ;;  %v760_v21 = vmax.f32 %v682_v13, 0.0  ;;  %v629_v22 = vadd.f32 %v965_v17, %v1253_v6  ;;  %v620_v23 = vpop.f32.mrb[3].mxu0  ;;  %v685_v24 = vadd.f32 %v1253_v6, %v684_v19 }
 0x172   : > { %794 = vst [vmem:[%s1260_s6 + $0x90] sm:$0xff] %v762_v15  ;;  %v744_v25 = vmax.f32 %v618_v16, 0.0  ;;  %v763_v26 = vmax.f32 %v693_v18, 0.0  ;;  %v621_v27 = vadd.f32 %v1253_v6, %v620_v23 }
 0x173   : > { %778 = vst [vmem:[%s1260_s6 + $0x10] sm:$0xff] %v746_v20  ;;  %792 = vst [vmem:[%s1260_s6 + $0x80] sm:$0xff] %v760_v21  ;;  %v747_v28 = vmax.f32 %v629_v22, 0.0  ;;  %v761_v29 = vmax.f32 %v685_v24, 0.0 }
 0x174   : > { %776 = vst [vmem:[%s1260_s6] sm:$0xff] %v744_v25  ;;  %795 = vst [vmem:[%s1260_s6 + $0x98] sm:$0xff] %v763_v26  ;;  %v745_v30 = vmax.f32 %v621_v27, 0.0 }
 0x175   : > { %779 = vst [vmem:[%s1260_s6 + $0x18] sm:$0xff] %v747_v28  ;;  %793 = vst [vmem:[%s1260_s6 + $0x88] sm:$0xff] %v761_v29 }
 0x176   : > { %777 = vst [vmem:[%s1260_s6 + $0x8] sm:$0xff] %v745_v30 }
 0x17d   : > { %v984_v31 = vpop.f32.mrb[4].mxu1 }
 0x17e   : > { %v968_v32 = vpop.f32.mrb[4].mxu0  ;;  %v706_v33 = vadd.f32 %v984_v31, %v1253_v6  ;;  %v697_v34 = vpop.f32.mrb[5].mxu1 }
 0x17f   : > { %v642_v35 = vadd.f32 %v968_v32, %v1253_v6  ;;  %v633_v36 = vpop.f32.mrb[5].mxu0  ;;  %v698_v37 = vadd.f32 %v1253_v6, %v697_v34  ;;  %v985_v38 = vpop.f32.mrb[6].mxu1 }
 0x180   : > { %v766_v39 = vmax.f32 %v706_v33, 0.0  ;;  %v634_v40 = vadd.f32 %v1253_v6, %v633_v36  ;;  %v969_v41 = vpop.f32.mrb[6].mxu0  ;;  %v709_v42 = vadd.f32 %v985_v38, %v1253_v6  ;;  %v700_v43 = vpop.f32.mrb[7].mxu1 }
 0x181   : > { %v750_v44 = vmax.f32 %v642_v35, 0.0  ;;  %v764_v45 = vmax.f32 %v698_v37, 0.0  ;;  %v645_v46 = vadd.f32 %v969_v41, %v1253_v6  ;;  %v636_v47 = vpop.f32.mrb[7].mxu0  ;;  %v701_v48 = vadd.f32 %v1253_v6, %v700_v43 }
 0x182   : > { %798 = vst [vmem:[%s1260_s6 + $0xb0] sm:$0xff] %v766_v39  ;;  %v748_v49 = vmax.f32 %v634_v40, 0.0  ;;  %v767_v50 = vmax.f32 %v709_v42, 0.0  ;;  %v637_v51 = vadd.f32 %v1253_v6, %v636_v47 }
 0x183   : > { %782 = vst [vmem:[%s1260_s6 + $0x30] sm:$0xff] %v750_v44  ;;  %796 = vst [vmem:[%s1260_s6 + $0xa0] sm:$0xff] %v764_v45  ;;  %v751_v52 = vmax.f32 %v645_v46, 0.0  ;;  %v765_v53 = vmax.f32 %v701_v48, 0.0 }
 0x184   : > { %780 = vst [vmem:[%s1260_s6 + $0x20] sm:$0xff] %v748_v49  ;;  %799 = vst [vmem:[%s1260_s6 + $0xb8] sm:$0xff] %v767_v50  ;;  %v749_v54 = vmax.f32 %v637_v51, 0.0 }
 0x185   : > { %783 = vst [vmem:[%s1260_s6 + $0x38] sm:$0xff] %v751_v52  ;;  %797 = vst [vmem:[%s1260_s6 + $0xa8] sm:$0xff] %v765_v53 }
 0x186   : > { %781 = vst [vmem:[%s1260_s6 + $0x28] sm:$0xff] %v749_v54 }
 0x18d   : > { %v988_v55 = vpop.f32.mrb[8].mxu1 }
 0x18e   : > { %v972_v56 = vpop.f32.mrb[8].mxu0  ;;  %v722_v57 = vadd.f32 %v988_v55, %v1253_v6  ;;  %v713_v58 = vpop.f32.mrb[9].mxu1 }
 0x18f   : > { %v658_v59 = vadd.f32 %v972_v56, %v1253_v6  ;;  %v649_v60 = vpop.f32.mrb[9].mxu0  ;;  %v714_v61 = vadd.f32 %v1253_v6, %v713_v58  ;;  %v989_v62 = vpop.f32.mrb[10].mxu1 }
 0x190   : > { %v770_v63 = vmax.f32 %v722_v57, 0.0  ;;  %v650_v0 = vadd.f32 %v1253_v6, %v649_v60  ;;  %v973_v1 = vpop.f32.mrb[10].mxu0  ;;  %v725_v2 = vadd.f32 %v989_v62, %v1253_v6  ;;  %v716_v3 = vpop.f32.mrb[11].mxu1 }
 0x191   : > { %v754_v4 = vmax.f32 %v658_v59, 0.0  ;;  %v768_v5 = vmax.f32 %v714_v61, 0.0  ;;  %v661_v7 = vadd.f32 %v973_v1, %v1253_v6  ;;  %v652_v8 = vpop.f32.mrb[11].mxu0  ;;  %v717_v9 = vadd.f32 %v1253_v6, %v716_v3 }
 0x192   : > { %802 = vst [vmem:[%s1260_s6 + $0xd0] sm:$0xff] %v770_v63  ;;  %v752_v10 = vmax.f32 %v650_v0, 0.0  ;;  %v771_v11 = vmax.f32 %v725_v2, 0.0  ;;  %v653_v12 = vadd.f32 %v1253_v6, %v652_v8 }
 0x193   : > { %786 = vst [vmem:[%s1260_s6 + $0x50] sm:$0xff] %v754_v4  ;;  %800 = vst [vmem:[%s1260_s6 + $0xc0] sm:$0xff] %v768_v5  ;;  %v755_v13 = vmax.f32 %v661_v7, 0.0  ;;  %v769_v14 = vmax.f32 %v717_v9, 0.0 }
 0x194   : > { %784 = vst [vmem:[%s1260_s6 + $0x40] sm:$0xff] %v752_v10  ;;  %803 = vst [vmem:[%s1260_s6 + $0xd8] sm:$0xff] %v771_v11  ;;  %v753_v15 = vmax.f32 %v653_v12, 0.0 }
 0x195   : > { %787 = vst [vmem:[%s1260_s6 + $0x58] sm:$0xff] %v755_v13  ;;  %801 = vst [vmem:[%s1260_s6 + $0xc8] sm:$0xff] %v769_v14 }
 0x196   : > { %785 = vst [vmem:[%s1260_s6 + $0x48] sm:$0xff] %v753_v15 }
 0x19d   : > { %v992_v16 = vpop.f32.mrb[12].mxu1 }
 0x19e   : > { %v976_v17 = vpop.f32.mrb[12].mxu0  ;;  %v738_v18 = vadd.f32 %v992_v16, %v1253_v6  ;;  %v729_v19 = vpop.f32.mrb[13].mxu1 }
 0x19f   : > { %v674_v20 = vadd.f32 %v976_v17, %v1253_v6  ;;  %v665_v21 = vpop.f32.mrb[13].mxu0  ;;  %v730_v22 = vadd.f32 %v1253_v6, %v729_v19  ;;  %v993_v23 = vpop.f32.mrb[14].mxu1 }
 0x1a0   : > { %v774_v24 = vmax.f32 %v738_v18, 0.0  ;;  %v666_v25 = vadd.f32 %v1253_v6, %v665_v21  ;;  %v977_v26 = vpop.f32.mrb[14].mxu0  ;;  %v741_v27 = vadd.f32 %v993_v23, %v1253_v6  ;;  %v732_v28 = vpop.f32.mrb[15].mxu1 }
 0x1a1   : > { %v758_v29 = vmax.f32 %v674_v20, 0.0  ;;  %v772_v30 = vmax.f32 %v730_v22, 0.0  ;;  %v677_v31 = vadd.f32 %v977_v26, %v1253_v6  ;;  %v668_v32 = vpop.f32.mrb[15].mxu0  ;;  %v733_v33 = vadd.f32 %v1253_v6, %v732_v28 }
 0x1a2   : > { %806 = vst [vmem:[%s1260_s6 + $0xf0] sm:$0xff] %v774_v24  ;;  %v756_v34 = vmax.f32 %v666_v25, 0.0  ;;  %v775_v35 = vmax.f32 %v741_v27, 0.0  ;;  %v669_v36 = vadd.f32 %v1253_v6, %v668_v32 }
 0x1a3   : > { %790 = vst [vmem:[%s1260_s6 + $0x70] sm:$0xff] %v758_v29  ;;  %804 = vst [vmem:[%s1260_s6 + $0xe0] sm:$0xff] %v772_v30  ;;  %v759_v37 = vmax.f32 %v677_v31, 0.0  ;;  %v773_v38 = vmax.f32 %v733_v33, 0.0 }
 0x1a4   : > { %788 = vst [vmem:[%s1260_s6 + $0x60] sm:$0xff] %v756_v34  ;;  %807 = vst [vmem:[%s1260_s6 + $0xf8] sm:$0xff] %v775_v35  ;;  %v757_v39 = vmax.f32 %v669_v36, 0.0 }
 0x1a5   : > { %791 = vst [vmem:[%s1260_s6 + $0x78] sm:$0xff] %v759_v37  ;;  %805 = vst [vmem:[%s1260_s6 + $0xe8] sm:$0xff] %v773_v38 }
 0x1a6   : > { %789 = vst [vmem:[%s1260_s6 + $0x68] sm:$0xff] %v757_v39 }
 0x1a7 PF: > { %s13_s14 = sadd.s32 1, %s1072_s14   ;;  %s1338_s12 = smov %s1068_s13 }
 0x1a8   : > { %p10_p5 = scmp.ge.s32.totalorder %s13_s14, 4   ;;  %s1339_s13 = smov %s1341_s15 }
 0x1aa   :  { %12 = sbr.rel (!%p10_p5) target bundleno = 2 (0x2), region = 64 }

</bundles_post_ra>
